<compile_context>
chip_gen: v7x
topology: tpu7x:2x2x1
jax: 0.10.0
libtpu: 0.0.40
codegen_flags: <defaults>
</compile_context>

<pallas_src>
import jax
import jax.numpy as jnp
from jax.experimental import pallas as pl
from jax.experimental.pallas import tpu as pltpu


def ada_kernel(x_ref, w1t_ref, w2t_ref, o_ref, pooled_ref):
    # x_ref block: (bt, l, c); w1t/w2t: (c, c) already transposed to (in, out).
    bt, l, c = x_ref.shape
    bt_pad = pooled_ref.shape[0] // 2

    x = x_ref[...]                                             # native dtype

    # Only needed when bt < 8 (stacked halves leave uninitialized pad rows);
    # static Python condition, so this compiles away for aligned bt.
    if bt != bt_pad:
        pooled_ref[...] = jnp.zeros_like(pooled_ref)

    # AdaptiveAvgPool1d(1) / AdaptiveMaxPool1d(1) over the sequence axis,
    # with f32 accumulation only on the (bt, c) pooled results (no full-block
    # f32 materialization of x).
    pooled_ref[0:bt, :] = jnp.sum(x, axis=1, dtype=jnp.float32) * (1.0 / l)
    pooled_ref[bt_pad:bt_pad + bt, :] = jnp.max(x, axis=1).astype(jnp.float32)
    pooled = pooled_ref[...]                                   # (2*bt_pad, c)

    # Shared MLP: Linear -> ReLU -> Linear.  Weights are (in, out), so this is
    # the standard contraction (no transposed-RHS dot, no per-step vxpose).
    h = jnp.maximum(
        jnp.dot(pooled, w1t_ref[...], preferred_element_type=jnp.float32), 0.0)
    out = jnp.dot(h, w2t_ref[...], preferred_element_type=jnp.float32)

    scale = jax.nn.sigmoid(out[0:bt, :] + out[bt_pad:bt_pad + bt, :])  # (bt, c)
    # Broadcast-multiply in x's native dtype.
    o_ref[...] = x * scale[:, None, :].astype(x.dtype)


def _vmem_capacity_bytes():
    """Per-core VMEM capacity; conservative (v7x-sized) fallback if unknown."""
    try:
        cap = getattr(pltpu.get_tpu_info(), "vmem_capacity_bytes", None)
        if cap:
            return int(cap)
    except Exception:
        pass
    return 64 << 20


def _choose_batch_tile(b, l, c, itemsize, block_budget_bytes, target_steps):
    """Batch rows per grid step.

    As large as the per-block VMEM budget allows while keeping >= target_steps
    grid steps (falls back gracefully for small b); rounded down to a multiple
    of 8 when >= 8 so the pooled scratch stays sublane-aligned."""
    bytes_per_row = l * c * itemsize
    bt_budget = max(1, block_budget_bytes // bytes_per_row)
    bt_steps = max(1, pl.cdiv(b, target_steps))
    bt = min(b, bt_budget, bt_steps)
    if bt >= 8:
        bt = (bt // 8) * 8
    return bt


def ada_forward(x, w1, w2):
    """x: (b, l, c). w1, w2: (dim, dim) in PyTorch Linear layout (out, in)."""
    b, l, c = x.shape
    itemsize = jnp.dtype(x.dtype).itemsize
    w_itemsize = jnp.dtype(w1.dtype).itemsize

    # Generation-aware sizing: 64 MiB VMEM -> v7x-class (2 TCs, tighter budget,
    # >= 4 grid steps so each core pipelines); 128 MiB -> v5e/v6e (bigger tiles).
    vmem_cap = _vmem_capacity_bytes()
    small_vmem = vmem_cap <= (64 << 20)
    block_budget = (8 << 20) if small_vmem else (14 << 20)
    limit_cap = (48 << 20) if small_vmem else (100 << 20)
    target_steps = 4 if small_vmem else 2

    bt = _choose_batch_tile(b, l, c, itemsize, block_budget, target_steps)
    bt_pad = ((bt + 7) // 8) * 8
    grid = (pl.cdiv(b, bt),)          # tail block padded; OOB writes dropped

    block_bytes = bt * l * c * itemsize
    # Double-buffered x + out blocks, one resident copy of each weight,
    # pooled scratch, plus slack; clamped per generation.
    vmem_need = (4 * block_bytes + 2 * c * c * w_itemsize
                 + 2 * bt_pad * c * 4 + (2 << 20))
    vmem_limit = int(min(max(vmem_need, 32 << 20), limit_cap))

    cost = pl.CostEstimate(
        flops=8 * b * c * c + 4 * b * l * c,
        transcendentals=b * c,
        bytes_accessed=2 * b * l * c * itemsize + 2 * c * c * w_itemsize,
    )

    # One-time host transpose: PyTorch (out, in) -> (in, out), so the kernel's
    # matmuls contract the leading weight axis directly.
    w1_t = jnp.asarray(w1.T)
    w2_t = jnp.asarray(w2.T)

    return pl.pallas_call(
        ada_kernel,
        out_shape=jax.ShapeDtypeStruct((b, l, c), x.dtype),
        grid_spec=pltpu.PrefetchScalarGridSpec(
            num_scalar_prefetch=0,
            grid=grid,
            in_specs=[
                pl.BlockSpec((bt, l, c), lambda i: (i, 0, 0)),
                # Weights: un-blocked, single resident VMEM copy (no double-buffer).
                pl.BlockSpec(memory_space=pltpu.MemorySpace.VMEM),
                pl.BlockSpec(memory_space=pltpu.MemorySpace.VMEM),
            ],
            out_specs=pl.BlockSpec((bt, l, c), lambda i: (i, 0, 0)),
            scratch_shapes=[pltpu.VMEM((2 * bt_pad, c), jnp.float32)],
        ),
        compiler_params=pltpu.CompilerParams(
            dimension_semantics=("parallel",),
            vmem_limit_bytes=vmem_limit,
        ),
        cost_estimate=cost,
    )(x, w1_t, w2_t)


def ada_reference(x, w1, w2):
    # Pure-JAX reference mirroring the PyTorch forward.
    avg = jnp.mean(x, axis=1)                                 # (b, c)
    mx = jnp.max(x, axis=1)                                   # (b, c)

    def mlp(v):
        h = jnp.maximum(
            jnp.dot(v, w1.T, precision=jax.lax.Precision.HIGHEST), 0.0)
        return jnp.dot(h, w2.T, precision=jax.lax.Precision.HIGHEST)

    scale = jax.nn.sigmoid(mlp(avg) + mlp(mx))                # (b, c)
    return x * scale[:, None, :]                              # (b, l, c)


if __name__ == "__main__":
    # NOTE: l is kept a multiple of 8 and c a multiple of 128 (lane-dense
    # stores); non-aligned l relies on Mosaic masking padded sublanes in the
    # max/sum reductions.
    b, l, dim = 4, 16, 128
    key = jax.random.PRNGKey(0)
    kx, k1, k2 = jax.random.split(key, 3)

    x = jax.random.normal(kx, (b, l, dim), dtype=jnp.float32)
    # Deterministic "Linear(dim, dim, bias=False)" weights, PyTorch (out, in) layout.
    bound = 1.0 / (dim ** 0.5)
    w1 = jax.random.uniform(k1, (dim, dim), jnp.float32, -bound, bound)
    w2 = jax.random.uniform(k2, (dim, dim), jnp.float32, -bound, bound)

    out = ada_forward(x, w1, w2)
    jax.block_until_ready(out)

    ref = ada_reference(x, w1, w2)
    assert out.shape == (b, l, dim)
    assert jnp.allclose(out, ref, atol=1e-4, rtol=1e-4), "mismatch vs reference"
    print("KERNEL_OK")
</pallas_src>

<mosaic_0001>
module attributes {stable_mosaic.version = 11 : i64} {
  func.func @ada_kernel(%arg0: i32, %arg1: memref<1x16x128xf32, #tpu.memory_space<vmem>>, %arg2: memref<128x128xf32, #tpu.memory_space<vmem>>, %arg3: memref<128x128xf32, #tpu.memory_space<vmem>>, %arg4: memref<1x16x128xf32, #tpu.memory_space<vmem>>, %arg5: memref<16x128xf32, #tpu.memory_space<vmem>>) attributes {dimension_semantics = [#tpu.dimension_semantics<parallel>], iteration_bounds = array<i64: 4>, scalar_prefetch = 0 : i64, scratch_operands = 1 : i64, tpu.core_type = #tpu.core_type<tc>, window_params = [{transform_indices = @transform_0, window_bounds = array<i64: 1, 16, 128>}, {pipeline_mode = #tpu.pipeline_mode<synchronous>, transform_indices = @transform_1, window_bounds = array<i64: 128, 128>}, {pipeline_mode = #tpu.pipeline_mode<synchronous>, transform_indices = @transform_2, window_bounds = array<i64: 128, 128>}, {transform_indices = @transform_3, window_bounds = array<i64: 1, 16, 128>}]} {
    %c0 = arith.constant 0 : index
    %c0_0 = arith.constant 0 : index
    %c0_1 = arith.constant 0 : index
    %0 = vector.load %arg1[%c0, %c0_0, %c0_1] : memref<1x16x128xf32, #tpu.memory_space<vmem>>, vector<1x16x128xf32>
    %cst = arith.constant 0.000000e+00 : f32
    %1 = vector.broadcast %cst : f32 to vector<16x128xf32>
    %c0_2 = arith.constant 0 : index
    %c0_3 = arith.constant 0 : index
    %2 = vector.load %arg5[%c0_2, %c0_3] : memref<16x128xf32, #tpu.memory_space<vmem>>, vector<16x128xf32>
    tpu.vector_store %arg5[%c0_2, %c0_3], %1 {strides = array<i32>} : memref<16x128xf32, #tpu.memory_space<vmem>>, vector<16x128xf32>,
    %cst_4 = arith.constant dense<0.000000e+00> : vector<1x128xf32>
    %3 = vector.multi_reduction <add>, %0, %cst_4 [1] : vector<1x16x128xf32> to vector<1x128xf32>
    %cst_5 = arith.constant 6.250000e-02 : f32
    %4 = vector.broadcast %cst_5 : f32 to vector<1x128xf32>
    %5 = arith.mulf %3, %4 : vector<1x128xf32>
    %c0_6 = arith.constant 0 : index
    %c0_7 = arith.constant 0 : index
    %6 = vector.load %arg5[%c0_6, %c0_7] : memref<16x128xf32, #tpu.memory_space<vmem>>, vector<1x128xf32>
    tpu.vector_store %arg5[%c0_6, %c0_7], %5 {strides = array<i32>} : memref<16x128xf32, #tpu.memory_space<vmem>>, vector<1x128xf32>,
    %cst_8 = arith.constant dense<0xFF800000> : vector<1x128xf32>
    %7 = vector.multi_reduction <maximumf>, %0, %cst_8 [1] : vector<1x16x128xf32> to vector<1x128xf32>
    %c8 = arith.constant 8 : index
    %c0_9 = arith.constant 0 : index
    %8 = vector.load %arg5[%c8, %c0_9] : memref<16x128xf32, #tpu.memory_space<vmem>>, vector<1x128xf32>
    tpu.vector_store %arg5[%c8, %c0_9], %7 {strides = array<i32>} : memref<16x128xf32, #tpu.memory_space<vmem>>, vector<1x128xf32>,
    %c0_10 = arith.constant 0 : index
    %c0_11 = arith.constant 0 : index
    %9 = vector.load %arg5[%c0_10, %c0_11] : memref<16x128xf32, #tpu.memory_space<vmem>>, vector<16x128xf32>
    %c0_12 = arith.constant 0 : index
    %c0_13 = arith.constant 0 : index
    %10 = vector.load %arg2[%c0_12, %c0_13] : memref<128x128xf32, #tpu.memory_space<vmem>>, vector<128x128xf32>
    %cst_14 = arith.constant dense<0.000000e+00> : vector<16x128xf32>
    %11 = tpu.matmul %9, %10, %cst_14 {dimension_numbers = #tpu.dot_dimension_numbers<[1], [0], [0], [1], [0, 0, 1, 1], [], []>} : vector<16x128xf32>, vector<128x128xf32>, vector<16x128xf32> -> vector<16x128xf32>
    %cst_15 = arith.constant 0.000000e+00 : f32
    %12 = vector.broadcast %cst_15 : f32 to vector<16x128xf32>
    %13 = arith.maximumf %11, %12 : vector<16x128xf32>
    %c0_16 = arith.constant 0 : index
    %c0_17 = arith.constant 0 : index
    %14 = vector.load %arg3[%c0_16, %c0_17] : memref<128x128xf32, #tpu.memory_space<vmem>>, vector<128x128xf32>
    %cst_18 = arith.constant dense<0.000000e+00> : vector<16x128xf32>
    %15 = tpu.matmul %13, %14, %cst_18 {dimension_numbers = #tpu.dot_dimension_numbers<[1], [0], [0], [1], [0, 0, 1, 1], [], []>} : vector<16x128xf32>, vector<128x128xf32>, vector<16x128xf32> -> vector<16x128xf32>
    %16 = vector.extract_strided_slice %15 {offsets = [0, 0], sizes = [1, 128], strides = [1, 1]} : vector<16x128xf32> to vector<1x128xf32>
    %17 = vector.extract_strided_slice %15 {offsets = [8, 0], sizes = [1, 128], strides = [1, 1]} : vector<16x128xf32> to vector<1x128xf32>
    %18 = arith.addf %16, %17 : vector<1x128xf32>
    %19 = arith.negf %18 : vector<1x128xf32>
    %20 = math.exp %19 : vector<1x128xf32>
    %cst_19 = arith.constant 1.000000e+00 : f32
    %21 = vector.broadcast %cst_19 : f32 to vector<1x128xf32>
    %22 = arith.addf %21, %20 : vector<1x128xf32>
    %23 = arith.divf %21, %22 : vector<1x128xf32>
    %24 = vector.shape_cast %23 : vector<1x128xf32> to vector<1x1x128xf32>
    %25 = vector.broadcast %24 : vector<1x1x128xf32> to vector<1x16x128xf32>
    %26 = arith.mulf %0, %25 : vector<1x16x128xf32>
    %c0_20 = arith.constant 0 : index
    %c0_21 = arith.constant 0 : index
    %c0_22 = arith.constant 0 : index
    %27 = vector.load %arg4[%c0_20, %c0_21, %c0_22] : memref<1x16x128xf32, #tpu.memory_space<vmem>>, vector<1x16x128xf32>
    tpu.vector_store %arg4[%c0_20, %c0_21, %c0_22], %26 {strides = array<i32>} : memref<1x16x128xf32, #tpu.memory_space<vmem>>, vector<1x16x128xf32>,
    return
  }
  func.func @transform_0(%arg0: i32) -> (i32, i32, i32) {
    %c0_i32 = arith.constant 0 : i32
    %c0_i32_0 = arith.constant 0 : i32
    %c0_i32_1 = arith.constant 0 : i32
    return %arg0, %c0_i32, %c0_i32_0 : i32, i32, i32
  }
  func.func @transform_1(%arg0: i32) -> (i32, i32) {
    %c0_i32 = arith.constant 0 : i32
    %c0_i32_0 = arith.constant 0 : i32
    %c0_i32_1 = arith.constant 0 : i32
    return %c0_i32, %c0_i32_0 : i32, i32
  }
  func.func @transform_2(%arg0: i32) -> (i32, i32) {
    %c0_i32 = arith.constant 0 : i32
    %c0_i32_0 = arith.constant 0 : i32
    %c0_i32_1 = arith.constant 0 : i32
    return %c0_i32, %c0_i32_0 : i32, i32
  }
  func.func @transform_3(%arg0: i32) -> (i32, i32, i32) {
    %c0_i32 = arith.constant 0 : i32
    %c0_i32_0 = arith.constant 0 : i32
    %c0_i32_1 = arith.constant 0 : i32
    return %arg0, %c0_i32, %c0_i32_0 : i32, i32, i32
  }
}

</mosaic_0001>

<bundles_post_ra>
// kernel: tpu_custom_call.1
= control target key start
LH: loop header
LB: loop body
LE: loop exit
PB: predicated region body
PF: predicated region fallthrough
CT: control target
= control target key end

     0   :  { %8 = vsyncpa [#allocation4], 0  ;;  %s1248_s0 = inlined_call_operand.hbm [shape: f32[4,16,128], index: 0, kind: input, shape index: {}]   ;;  %s1249_s1 = inlined_call_operand.hbm [shape: f32[128,128], index: 1, kind: input, shape index: {}]   ;;  %s1250_s2 = inlined_call_operand.hbm [shape: f32[128,128], index: 2, kind: input, shape index: {}]   ;;  %s1251_s3 = inlined_call_operand.hbm [shape: f32[4,16,128], index: 3, kind: output, shape index: {}]  }
   0x1   :  { %10 = vsyncpa [#allocation4 + $0x1], 0 }
   0x2   :  { %11 = vsyncpa [#allocation7], 0 }
   0x3   :  { %12 = vsyncpa [#allocation5], 0 }
   0x4   :  { %14 = vsyncpa [#allocation5 + $0x1], 0  ;;  %s1000_s12 = smov 0   ;;  %s1002_s13 = smov 0  }
   0x5   :  { %s1004_s14 = smov 0   ;;  %s1006_s15 = smov 0  }
   0x6 LB: > { %s1021_s16 = sadd.s32 4294967295, %s969_s15   ;;  %s546_s17 = sadd.s32 4294967294, %s969_s15   ;;  %s969_s15 = sphi %s1006_s15, %s1270_s15   ;;  %s965_s14 = sphi %s1004_s14, %s1269_s14   ;;  %s961_s13 = sphi %s1002_s13, %s1268_s13   ;;  %s957_s12 = sphi %s1000_s12, %s1267_s12  }
   0x7   : > { %p40_p0 = scmp.ne.s32.totalorder %s961_s13, %s957_s12  ;;  %p1252_p1 = scmp.eq.s32.totalorder %s1021_s16, 0 }
   0x8   : > { %p112_p3 = scmp.eq.s32.totalorder %s546_s17, 3  ;;  %p547_p5 = scmp.ge.s32.totalorder %s969_s15, 1 }
   0x9   : > { %p1030_p4 = por %p1252_p1, %p40_p0  ;;  %p119_p7 = scmp.lt.s32.totalorder %s969_s15, 5 }
   0xa   : > { %p1035_p6 = por %p112_p3, %p40_p0  ;;  %s971_s21 = smov [#allocation6]  }
   0xb   : > { %s1255_s18 = scalar_select %p1030_p4, 1, 0 }
   0xc   : > { %s1256_s19 = scalar_select %p1035_p6, 1, 0 }
   0xd   : > { %p1040_p8 = pnand %p547_p5, %p119_p7  ;;  %s131_s22 = sshll.u32 %s971_s21, 4  ;;  %s132_s22 = int_to_ptr.vmem [resolvable:$true] %s131_s22 }
   0xe   : > { %s972_s24 = smov [#allocation8]   ;;  %s813_s28 = scalar_lea.hbm %s1249_s1, 2048 }
   0xf   : > { %s1257_s20 = scalar_select %p1040_p8, 1, 0 }
  0x10   : > { %p749_p9 = pneg %p1040_p8  ;;  %s144_s25 = sshll.u32 %s972_s24, 4  ;;  %s1052_s25 = int_to_ptr.vmem [resolvable:$true] %s144_s25 }
  0x11   : > { %p814_p11 = scmp.ne.s32.totalorder %s1249_s1, %s813_s28  ;;  %p820_p3 = scmp.lt.u32.totalorder %s813_s28, %s1249_s1 }
  0x12   : > { %p1048_p10 = pnand %p749_p9, %p1252_p1 }
  0x14   : > { %p815_p12 = pneg %p1048_p10 }
  0x16   : > { %p816_p13 = pnand %p815_p12, %p814_p11 }
  0x18   : > { %p817_p0 = pneg %p816_p13 }
  0x1a   : > { %p822_p5 = pnand %p820_p3, %p817_p0 }
  0x1c   : > { %825 = shalt.err (!%p822_p5)
}
  0x1d   : > { %s826_s6 = scalar_lea.vmem %s132_s22, 2048  ;;  %p834_p2 = scmp.lt.s32.totalorder %s132_s22, %s132_s22 }
  0x1e   : > { %p827_p7 = scmp.ne.s32.totalorder %s132_s22, %s826_s6  ;;  %p835_p6 = scmp.lt.s32.totalorder %s826_s6, %s826_s6 }
  0x20   : > { %p829_p9 = pnand %p827_p7, %p815_p12  ;;  %p836_p4 = por %p835_p6, %p834_p2 }
  0x22   : > { %p830_p1 = pneg %p829_p9 }
  0x24   : > { %p837_p8 = pnand %p836_p4, %p830_p1 }
  0x26   : > { %840 = shalt.err (!%p837_p8)
}
  0x27   : > { %s973_s7 = smov 128   ;;  %s974_s8 = smov 8  }
  0x28   : > { %752 = dma.hbm_to_vmem [thread:$0]  (!%p1048_p10), %s1249_s1, 2048, %s132_s22, [#allocation7], %s973_s7, %s973_s7, %s974_s8  }
  0x29   : > { %s841_s21 = scalar_lea.hbm %s1250_s2, 2048 }
  0x2a   : > { %p842_p1 = scmp.ne.s32.totalorder %s1250_s2, %s841_s21  ;;  %p848_p6 = scmp.lt.u32.totalorder %s841_s21, %s1250_s2 }
  0x2c   : > { %p844_p2 = pnand %p842_p1, %p815_p12 }
  0x2e   : > { %p845_p4 = pneg %p844_p2 }
  0x30   : > { %p850_p8 = pnand %p848_p6, %p845_p4 }
  0x32   : > { %853 = shalt.err (!%p850_p8)
}
  0x33   : > { %s854_s22 = scalar_lea.vmem %s1052_s25, 2048  ;;  %p862_p3 = scmp.lt.s32.totalorder %s1052_s25, %s1052_s25 }
  0x34   : > { %p855_p11 = scmp.ne.s32.totalorder %s1052_s25, %s854_s22  ;;  %p863_p5 = scmp.lt.s32.totalorder %s854_s22, %s854_s22 }
  0x36   : > { %p857_p13 = pnand %p855_p11, %p815_p12  ;;  %p864_p7 = por %p863_p5, %p862_p3 }
  0x38   : > { %p858_p0 = pneg %p857_p13 }
  0x3a   : > { %p865_p9 = pnand %p864_p7, %p858_p0 }
  0x3c   : > { %868 = shalt.err (!%p865_p9)
}
  0x3d   : > { %755 = dma.hbm_to_vmem [thread:$0]  (!%p1048_p10), %s1250_s2, 2048, %s1052_s25, [#allocation7], %s973_s7, %s973_s7, %s974_s8  }
  0x3e   : > { %s1108_s23 = sadd.s32 1, %s969_s15   ;;  %s27_s4 = sadd.s32 1, %s965_s14 }
  0x3f   : > { %s24_s5 = ssub.s32 %s969_s15, %s1108_s23  ;;  %p34_p12 = scmp.ne.s32.totalorder %s965_s14, %s961_s13 }
  0x40   : > { %p25_p1 = scmp.eq.s32.totalorder %s24_s5, 0  ;;  %p35_p2 = scmp.eq.s32.totalorder %s969_s15, 0 }
  0x41   : > { %p1259_p4 = scmp.eq.s32.totalorder %s1021_s16, 3  ;;  %p766_p8 = scmp.lt.s32.totalorder %s969_s15, 4 }
  0x42   : > { %s1124_s9 = scalar_select %p25_p1, %s965_s14, %s27_s4  }
  0x43   : > { %p1118_p6 = por %p1259_p4, %p34_p12  ;;  %p36_p11 = por %p35_p2, %p34_p12 }
  0x44   : > { %s158_s10 = sand.u32 1, %s965_s14   ;;  %s565_s25 = sshll.u32 %s969_s15, 8 }
  0x45   : > { %s551_s11 = sshll.u32 %s158_s10, 4  ;;  %s1131_s24 = scalar_lea.hbm %s1248_s0, %s565_s25 }
  0x46   : > { %s162_s26 = scalar_lea.vmem [#allocation3], %s551_s11  ;;  %p1135_p10 = pnand %p766_p8, %p36_p11 }
  0x47   : > { %s169_s27 = sshll.u32 %s162_s26, 4  ;;  %s1139_s22 = scalar_lea.sflag [#allocation4], %s158_s10  ;;  %s1133_s27 = int_to_ptr.vmem [resolvable:$true] %s169_s27 }
  0x48   : > { %s869_s29 = scalar_lea.hbm %s1131_s24, 256  ;;  %p871_p0 = pneg %p1135_p10 }
  0x49   : > { %p870_p13 = scmp.ne.s32.totalorder %s1131_s24, %s869_s29  ;;  %s874_s5 = scalar_lea.hbm %s1248_s0, 1024 }
  0x4a   : > { %p875_p7 = scmp.lt.u32.totalorder %s1131_s24, %s1248_s0  ;;  %p876_p9 = scmp.lt.u32.totalorder %s874_s5, %s869_s29 }
  0x4b   : > { %p872_p3 = pnand %p871_p0, %p870_p13  ;;  %p878_p1 = scmp.lt.u32.totalorder %s869_s29, %s1131_s24 }
  0x4c   : > { %p877_p12 = por %p876_p9, %p875_p7 }
  0x4d   : > { %p873_p5 = pneg %p872_p3 }
  0x4e   : > { %p879_p2 = por %p878_p1, %p877_p12 }
  0x50   : > { %p880_p4 = pnand %p879_p2, %p873_p5 }
  0x52   : > { %883 = shalt.err (!%p880_p4)
}
  0x53   : > { %s884_s10 = scalar_lea.vmem %s1133_s27, 256  ;;  %s975_s17 = smov [#allocation3]  }
  0x54   : > { %p885_p8 = scmp.ne.s32.totalorder %s1133_s27, %s884_s10  ;;  %s889_s21 = sshll.u32 %s975_s17, 4  ;;  %s890_s21 = int_to_ptr.vmem [resolvable:$false] %s889_s21 }
  0x55   : > { %s891_s26 = scalar_lea.vmem %s890_s21, 512  ;;  %p892_p3 = scmp.lt.s32.totalorder %s1133_s27, %s890_s21 }
  0x56   : > { %p887_p11 = pnand %p885_p8, %p871_p0  ;;  %p893_p7 = scmp.lt.s32.totalorder %s891_s26, %s884_s10 }
  0x58   : > { %p888_p13 = pneg %p887_p11  ;;  %p894_p9 = por %p893_p7, %p892_p3 }
  0x5a   : > { %p895_p12 = pnand %p894_p9, %p888_p13 }
  0x5c   : > { %898 = shalt.err (!%p895_p12)
}
  0x5d   : > { %759 = dma.hbm_to_vmem [thread:$0]  (!%p1135_p10), %s1131_s24, 256, %s1133_s27, %s1139_s22, %s973_s7, %s973_s7, %s974_s8  }
  0x5e   : > { %p1262_p0 = scmp.ne.s32.totalorder %s1257_s20, 0 }
  0x5f   : > { %s1173_s29 = sand.u32 (!%p1262_p0), 1, %s961_s13   ;;  %p1263_p5 = scmp.ne.s32.totalorder (!%p1262_p0), %s1255_s18, 0 }
  0x60   : > { %181 = sbr.rel (%p1262_p0) target bundleno = 618 (0x26a), region = 32  ;;  %s555_s30 = sshll.u32 (!%p1262_p0), %s1173_s29, 4 }
  0x61   : > { %s184_s4 = scalar_lea.sflag (!%p1262_p0), [#allocation4], %s1173_s29  ;;  %s187_s28 = scalar_lea.vmem (!%p1262_p0), [#allocation3], %s555_s30 }
  0x67   : > { %944 = dma.done.wait (%p1263_p5), %s184_s4, 256  }
  0x68   : > { %946 = vsyncadd (%p1263_p5), %s184_s4, 4294967040  ;;  %p1264_p10 = scmp.eq.s32.totalorder %s1021_s16, 0 }
  0x6a   : > { %948 = dma.done.wait (%p1264_p10), [#allocation7], 4096   ;;  %p1265_p1 = pmov %p1264_p10 }
  0x6b   : > { %v976_v0 = vmov 0.0   ;;  %v241_v1 = vld [vmem:[#allocation6] sm:$0xff]  ;;  %v242_v2 = vld [vmem:[#allocation6 + $0x8] sm:$0xff]  ;;  %v243_v3 = vld [vmem:[#allocation6 + $0x10] sm:$0xff]  ;;  %s566_s18 = sshll.u32 %s1021_s16, 8  ;;  %s217_s20 = scalar_lea.vmem [#allocation9], %s555_s30 }
  0x6c   : > { %950 = vsyncadd (%p1265_p1), [#allocation7], 4294963200  ;;  %220 = vst [vmem:[#allocation2] sm:$0xff] %v976_v0  ;;  %v673_v4 = vpack.c.bf16 %v242_v2, %v241_v1  ;;  %v244_v5 = vld [vmem:[#allocation6 + $0x18] sm:$0xff]  ;;  %v245_v7 = vld [vmem:[#allocation6 + $0x20] sm:$0xff]  ;;  %s454_s7 = sshll.u32 %s217_s20, 4  ;;  %s1201_s27 = scalar_lea.hbm %s1251_s3, %s566_s18  ;;  %s1203_s7 = int_to_ptr.vmem [resolvable:$true] %s454_s7 }
  0x6d   : > { %221 = vst [vmem:[#allocation2 + $0x8] sm:$0xff] %v976_v0  ;;  %v677_v6 = vpack.c.bf16 %v244_v5, %v243_v3  ;;  %v246_v8 = vld [vmem:[#allocation6 + $0x28] sm:$0xff]  ;;  %v247_v9 = vld [vmem:[#allocation6 + $0x30] sm:$0xff]  ;;  %v248_v11 = vld [vmem:[#allocation6 + $0x38] sm:$0xff]  ;;  %s441_s16 = scalar_lea.sflag [#allocation5], %s1173_s29  ;;  %s899_s22 = scalar_lea.vmem %s1203_s7, 256 }
  0x6e   : > { %674 = vmatprep.subr.bf16.mxu0 %v673_v4  ;;  %v681_v10 = vpack.c.bf16 %v246_v8, %v245_v7  ;;  %v1187_v12 = vld [vmem:[%s187_s28] sm:$0xff]  ;;  %v1189_v13 = vld [vmem:[%s187_s28 + $0x8] sm:$0xff]  ;;  %v685_v26 = vpack.c.bf16 %v248_v11, %v247_v9  ;;  %p900_p2 = scmp.ne.s32.totalorder %s1203_s7, %s899_s22  ;;  %s977_s5 = smov [#allocation9]  }
  0x6f   : > { %676 = vmatpush3.bf16.msra.mxu0 %v673_v4  ;;  %v222_v14 = vadd.f32 %v1189_v13, %v1187_v12  ;;  %v231_v15 = vmax.f32 %v1187_v12, %v1189_v13  ;;  %v334_v16 = vld [vmem:[#allocation8] sm:$0xff]  ;;  %v335_v17 = vld [vmem:[#allocation8 + $0x8] sm:$0xff]  ;;  %v336_v18 = vld [vmem:[#allocation8 + $0x10] sm:$0xff]  ;;  %s903_s11 = sshll.u32 %s977_s5, 4  ;;  %s904_s11 = int_to_ptr.vmem [resolvable:$false] %s903_s11 }
  0x70   : > { %678 = vmatprep.subr.bf16.mxu0 %v677_v6  ;;  %v705_v19 = vpack.c.bf16 %v335_v17, %v334_v16  ;;  %v337_v20 = vld [vmem:[#allocation8 + $0x18] sm:$0xff]  ;;  %v338_v24 = vld [vmem:[#allocation8 + $0x20] sm:$0xff]  ;;  %v339_v25 = vld [vmem:[#allocation8 + $0x28] sm:$0xff]  ;;  %v432_v16 = vlaneseq  ;;  %p901_p4 = pnand %p900_p2, %p1118_p6  ;;  %s905_s25 = scalar_lea.vmem %s904_s11, 512 }
  0x71   : > { %v223_v21 = vrot.slane %v222_v14, 4  ;;  %v232_v22 = vrot.slane %v231_v15, 4  ;;  %v709_v23 = vpack.c.bf16 %v337_v20, %v336_v18  ;;  %v249_v27 = vld [vmem:[#allocation6 + $0x40] sm:$0xff]  ;;  %v250_v28 = vld [vmem:[#allocation6 + $0x48] sm:$0xff]  ;;  %v713_v31 = vpack.c.bf16 %v339_v25, %v338_v24  ;;  %v340_v34 = vld [vmem:[#allocation8 + $0x30] sm:$0xff]  ;;  %p906_p11 = scmp.lt.s32.totalorder %s1203_s7, %s904_s11  ;;  %p907_p13 = scmp.lt.s32.totalorder %s905_s25, %s899_s22 }
  0x72   : > { %706 = vmatprep.subr.bf16.mxu1 %v705_v19  ;;  %v341_v35 = vld [vmem:[#allocation8 + $0x38] sm:$0xff]  ;;  %v689_v36 = vpack.c.bf16 %v250_v28, %v249_v27  ;;  %v251_v37 = vld [vmem:[#allocation6 + $0x50] sm:$0xff]  ;;  %v342_v44 = vld [vmem:[#allocation8 + $0x40] sm:$0xff]  ;;  %v433_v17 = vshrl.u32 %v432_v16, 7  ;;  %p902_p8 = pneg %p901_p4 }
  0x73   : > { %680 = vmatpush3.bf16.msra.mxu0 %v677_v6  ;;  %v224_v29 = vadd.f32 %v223_v21, %v222_v14  ;;  %v233_v30 = vmax.f32 %v231_v15, %v232_v22  ;;  %708 = vmatpush3.bf16.msra.mxu1 %v705_v19  ;;  %v252_v38 = vld [vmem:[#allocation6 + $0x58] sm:$0xff]  ;;  %v717_v41 = vpack.c.bf16 %v341_v35, %v340_v34  ;;  %v343_v45 = vld [vmem:[#allocation8 + $0x48] sm:$0xff]  ;;  %v253_v47 = vld [vmem:[#allocation6 + $0x60] sm:$0xff]  ;;  %p908_p3 = por %p907_p13, %p906_p11 }
  0x74   : > { %682 = vmatprep.subr.bf16.mxu0 %v681_v10  ;;  %710 = vmatprep.subr.bf16.mxu1 %v709_v23  ;;  %v693_v46 = vpack.c.bf16 %v252_v38, %v251_v37  ;;  %v254_v48 = vld [vmem:[#allocation6 + $0x68] sm:$0xff]  ;;  %v721_v51 = vpack.c.bf16 %v343_v45, %v342_v44  ;;  %v344_v53 = vld [vmem:[#allocation8 + $0x50] sm:$0xff]  ;;  %v345_v54 = vld [vmem:[#allocation8 + $0x58] sm:$0xff]  ;;  %v434_v18 = vsub.s32 0, %v433_v17 }
  0x75   : > { %v225_v32 = vrot.slane %v224_v29, 2  ;;  %v234_v33 = vrot.slane %v233_v30, 2  ;;  %v697_v55 = vpack.c.bf16 %v254_v48, %v253_v47  ;;  %v255_v56 = vld [vmem:[#allocation6 + $0x70] sm:$0xff]  ;;  %v256_v57 = vld [vmem:[#allocation6 + $0x78] sm:$0xff]  ;;  %v725_v58 = vpack.c.bf16 %v345_v54, %v344_v53  ;;  %v346_v59 = vld [vmem:[#allocation8 + $0x60] sm:$0xff]  ;;  %p909_p7 = pnand %p908_p3, %p902_p8 }
  0x76   : > { %v347_v60 = vld [vmem:[#allocation8 + $0x68] sm:$0xff]  ;;  %v701_v61 = vpack.c.bf16 %v256_v57, %v255_v56  ;;  %v348_v1 = vld [vmem:[#allocation8 + $0x70] sm:$0xff]  ;;  %v349_v2 = vld [vmem:[#allocation8 + $0x78] sm:$0xff] }
  0x77   : > { %684 = vmatpush3.bf16.msra.mxu0 %v681_v10  ;;  %v226_v39 = vadd.f32 %v225_v32, %v224_v29  ;;  %v235_v40 = vmax.f32 %v233_v30, %v234_v33  ;;  %712 = vmatpush3.bf16.msra.mxu1 %v709_v23  ;;  %v729_v62 = vpack.c.bf16 %v347_v60, %v346_v59 }
  0x78   : > { %686 = vmatprep.subr.bf16.mxu0 %v685_v26  ;;  %714 = vmatprep.subr.bf16.mxu1 %v713_v31  ;;  %v733_v3 = vpack.c.bf16 %v349_v2, %v348_v1 }
  0x79   : > { %v227_v42 = vrot.slane %v226_v39, 1  ;;  %v236_v43 = vrot.slane %v235_v40, 1 }
  0x7b   : > { %688 = vmatpush3.bf16.msra.mxu0 %v685_v26  ;;  %v228_v49 = vadd.f32 %v227_v42, %v226_v39  ;;  %v237_v50 = vmax.f32 %v235_v40, %v236_v43  ;;  %716 = vmatpush3.bf16.msra.mxu1 %v713_v31 }
  0x7c   : > { %690 = vmatprep.subr.bf16.mxu0 %v689_v36  ;;  %718 = vmatprep.subr.bf16.mxu1 %v717_v41 }
  0x7d   : > { %v229_v52 = vmul.f32 0.0625, %v228_v49  ;;  %238 = vst [vmem:[#allocation2 + $0x8] sm:$0x1] %v237_v50 }
  0x7f   : > { %692 = vmatpush3.bf16.msra.mxu0 %v689_v36  ;;  %230 = vst [vmem:[#allocation2] sm:$0x1] %v229_v52  ;;  %720 = vmatpush3.bf16.msra.mxu1 %v717_v41 }
  0x80   : > { %694 = vmatprep.subr.bf16.mxu0 %v693_v46  ;;  %722 = vmatprep.subr.bf16.mxu1 %v721_v51 }
  0x83   : > { %696 = vmatpush3.bf16.msra.mxu0 %v693_v46  ;;  %724 = vmatpush3.bf16.msra.mxu1 %v721_v51 }
  0x84   : > { %698 = vmatprep.subr.bf16.mxu0 %v697_v55  ;;  %726 = vmatprep.subr.bf16.mxu1 %v725_v58  ;;  %v240_v0 = vld [vmem:[#allocation2 + $0x8] sm:$0xff] }
  0x86   : > { %v239_v63 = vld [vmem:[#allocation2] sm:$0xff] }
  0x87   : > { %700 = vmatpush3.bf16.msra.mxu0 %v697_v55  ;;  %635 = vmatprep.mubr.f32.mxu0 %v239_v63 }
  0x88   : > { %702 = vmatprep.subr.bf16.mxu0 %v701_v61  ;;  %728 = vmatpush3.bf16.msra.mxu1 %v725_v58 }
  0x89   : > { %730 = vmatprep.subr.bf16.mxu1 %v729_v62 }
  0x8b   : > { %704 = vmatpush3.bf16.msra.mxu0 %v701_v61 }
  0x8c   : > { %732 = vmatpush3.bf16.msra.mxu1 %v729_v62 }
  0x8d   : > { %734 = vmatprep.subr.bf16.mxu1 %v733_v3 }
  0x8e   : > { %636 = vmatmul.mubr.f32.vlgmr.msra.gmra.mrb[0].mxu0 %v240_v0 }
  0x90   : > { %736 = vmatpush3.bf16.msra.mxu1 %v733_v3 }
 0x161   : > { %v637_v4 = vpop.f32.mrb[0].mxu0 }
 0x162   : > { %v323_v5 = vpop.f32.mrb[1].mxu0  ;;  %v333_v7 = vmax.f32 %v637_v4, 0.0 }
 0x163   : > { %v332_v6 = vmax.f32 %v323_v5, 0.0 }
 0x165   : > { %670 = vmatprep.mubr.f32.mxu1 %v332_v6 }
 0x166   : > { %671 = vmatmul.mubr.f32.vlgmr.msra.gmra.mrb[0].mxu1 %v333_v7 }
 0x239   : > { %v672_v8 = vpop.f32.mrb[0].mxu1 }
 0x23a   : > { %v416_v9 = vpop.f32.mrb[1].mxu1 }
 0x23b   : > { %v425_v10 = vadd.f32 %v672_v8, %v416_v9 }
 0x23d   : > { %v559_v11 = vmul.f32 -1.442695, %v425_v10 }
 0x23f   : > { %809 = vpow2.f32 %v559_v11 }
 0x249   : > { %v810_v14 = vpop.eup %809 }
 0x24a   : > { %v429_v15 = vadd.f32 1.0, %v810_v14 }
 0x24c   : > { %811 = vrcp.f32 %v429_v15 }
 0x256   : > { %v812_v19 = vpop.eup %811 }
 0x257   : > { %v435_v20 = vrot.slane %v812_v19, %v434_v18 }
 0x259   : > { %v436_v21 = vmul.f32 %v435_v20, %v1187_v12  ;;  %v437_v22 = vmul.f32 %v435_v20, %v1189_v13 }
 0x25b   : > { %438 = vst [vmem:[%s217_s20] sm:$0xff] %v436_v21  ;;  %439 = vst [vmem:[%s217_s20 + $0x8] sm:$0xff] %v437_v22 }
 0x25c   : > { %912 = shalt.err (!%p909_p7)
}
 0x25d   : > { %s913_s10 = scalar_lea.hbm %s1201_s27, 256  ;;  %s917_s26 = scalar_lea.hbm %s1251_s3, 1024 }
 0x25e   : > { %p914_p9 = scmp.ne.s32.totalorder %s1201_s27, %s913_s10  ;;  %p918_p5 = scmp.lt.u32.totalorder %s1201_s27, %s1251_s3 }
 0x25f   : > { %p919_p10 = scmp.lt.u32.totalorder %s917_s26, %s913_s10  ;;  %p921_p2 = scmp.lt.u32.totalorder %s913_s10, %s1201_s27 }
 0x260   : > { %p915_p12 = pnand %p914_p9, %p1118_p6 }
 0x261   : > { %p920_p1 = por %p919_p10, %p918_p5 }
 0x262   : > { %p916_p0 = pneg %p915_p12 }
 0x263   : > { %p922_p4 = por %p921_p2, %p920_p1 }
 0x265   : > { %p923_p8 = pnand %p922_p4, %p916_p0 }
 0x267   : > { %926 = shalt.err (!%p923_p8)
}
 0x268   : > { %s978_s28 = smov 128   ;;  %s979_s18 = smov 8  }
 0x269   : > { %747 = dma.vmem_to_hbm [thread:$0]  (%p1118_p6), %s1203_s7, 256, %s1201_s27, %s441_s16, %s978_s28, %s978_s28, %s979_s18  }
 0x26a PF: > { %p769_p11 = scmp.ge.s32.totalorder %s969_s15, 2  ;;  %s469_s20 = sand.u32 1, %s957_s12  }
 0x26b   : > { %p1266_p13 = scmp.ne.s32.totalorder %s1256_s19, 0  ;;  %s470_s8 = scalar_lea.sflag [#allocation5], %s469_s20 }
 0x26d   : > { %p761_p3 = pnand %p769_p11, %p1266_p13 }
 0x26f   : > { %952 = dma.done.wait (!%p761_p3), %s470_s8, 256  }
 0x270   : > { %954 = vsyncadd (!%p761_p3), %s470_s8, 4294967040  ;;  %p17_p7 = scmp.ge.s32.totalorder %s1108_s23, 6   ;;  %s1267_s12 = smov %s961_s13 }
 0x271   : > { %s1268_s13 = smov %s965_s14  ;;  %s1269_s14 = smov %s1124_s9 }
 0x272   : > { %s1270_s15 = smov %s1108_s23  ;;  %19 = sbr.rel (!%p17_p7) target bundleno = 6 (0x6), region = 85 }
 0x279   :  { %475 = vsyncpa [#allocation4], 1 }
 0x27a   :  { %477 = vsyncpa [#allocation4 + $0x1], 1 }
 0x27b   :  { %478 = vsyncpa [#allocation7], 1 }
 0x27c   :  { %479 = vsyncpa [#allocation5], 1 }
 0x27d   :  { %481 = vsyncpa [#allocation5 + $0x1], 1 }

</bundles_post_ra>
